<compile_context>
chip_gen: v7x
topology: tpu7x:2x2x1
jax: 0.10.0
libtpu: 0.0.40
codegen_flags: <defaults>
</compile_context>

<pallas_src>
import functools
import math

import jax
import jax.numpy as jnp
from jax.experimental import pallas as pl
from jax.experimental.pallas import tpu as pltpu

D_IN, D_H1, D_H2 = 784, 500, 256   # logical (PyTorch) dims
D_H1_P = 512                       # lane-padded hidden-1 (multiple of 128)


def _round_up(x, m):
    return (x + m - 1) // m * m


def _choose_batch_tile(B, batch_tile=None):
    if batch_tile is not None:
        tb = _round_up(int(batch_tile), 16)
    else:
        # Large tile to amortize per-grid-step overhead, but keep >= 2 grid
        # steps so both v7x TensorCores have work on the "parallel" axis.
        half = pl.cdiv(B, 2)
        align = 256 if half >= 256 else 16   # 256 rows fully feed the MXU
        tb = min(1024, _round_up(half, align))
    # Never pad the batch by more than one tile's worth of rows.
    tb = min(tb, _round_up(B, 16) if B >= 16 else _round_up(B, 8))
    return max(tb, 8)


def encoder_kernel(x_ref, w1_ref, b1_ref, w2_ref, b2_ref, w3_ref, b3_ref, o_ref):
    # x_ref:  (tb, 784)   f32  (cast to bf16 in-kernel; VPU has slack)
    # w1_ref: (784, 512)  bf16   b1_ref: (1, 512) f32
    # w2_ref: (512, 256)  bf16   b2_ref: (1, 256) f32
    # w3_ref: (256, enc_p) bf16  b3_ref: (1, enc_p) f32
    # o_ref:  (tb, enc_p)
    x = x_ref[...].astype(jnp.bfloat16)
    h1 = jnp.dot(x, w1_ref[...], preferred_element_type=jnp.float32)
    h1 = jnp.maximum(h1 + b1_ref[...], 0.0)            # f32 bias + ReLU
    h2 = jnp.dot(h1.astype(jnp.bfloat16), w2_ref[...],
                 preferred_element_type=jnp.float32)
    h2 = jnp.maximum(h2 + b2_ref[...], 0.0)
    h3 = jnp.dot(h2.astype(jnp.bfloat16), w3_ref[...],
                 preferred_element_type=jnp.float32)
    h3 = jnp.maximum(h3 + b3_ref[...], 0.0)
    o_ref[...] = h3.astype(o_ref.dtype)


def prepack_params(params):
    """One-time weight/bias cast+pad (do NOT redo per forward call)."""
    w1, b1, w2, b2, w3, b3 = params
    enc = w3.shape[1]
    enc_p = _round_up(enc, 128)
    w1p = jnp.pad(w1.astype(jnp.bfloat16), ((0, 0), (0, D_H1_P - D_H1)))
    b1p = jnp.pad(b1.astype(jnp.float32), (0, D_H1_P - D_H1)).reshape(1, D_H1_P)
    w2p = jnp.pad(w2.astype(jnp.bfloat16), ((0, D_H1_P - D_H1), (0, 0)))
    b2p = b2.astype(jnp.float32).reshape(1, D_H2)
    w3p = jnp.pad(w3.astype(jnp.bfloat16), ((0, 0), (0, enc_p - enc)))
    b3p = jnp.pad(b3.astype(jnp.float32), (0, enc_p - enc)).reshape(1, enc_p)
    return (w1p, b1p, w2p, b2p, w3p, b3p), enc


def encoder_forward(x_nchw, packed_params, *, enc, batch_tile=None,
                    out_dtype=jnp.float32):
    """x_nchw: (B, 1, 28, 28) float32. Returns (B, enc) out_dtype."""
    w1p, b1p, w2p, b2p, w3p, b3p = packed_params
    enc_p = w3p.shape[1]
    B = x_nchw.shape[0]
    assert math.prod(x_nchw.shape[1:]) == D_IN, "expected 1x28x28 inputs"

    # Flatten (row-major == torch.nn.Flatten(start_dim=1)). K stays 784 and
    # f32: the bf16 cast happens in-kernel, so no extra HBM pass over x.
    x = x_nchw.reshape(B, D_IN).astype(jnp.float32)

    tb = _choose_batch_tile(B, batch_tile)
    B_pad = _round_up(B, tb)
    if B_pad != B:
        x = jnp.pad(x, ((0, B_pad - B), (0, 0)))
    grid = (B_pad // tb,)

    out = pl.pallas_call(
        encoder_kernel,
        out_shape=jax.ShapeDtypeStruct((B_pad, enc_p), out_dtype),
        grid_spec=pl.GridSpec(
            grid=grid,
            in_specs=[
                pl.BlockSpec((tb, D_IN), lambda i: (i, 0)),
                pl.BlockSpec((D_IN, D_H1_P), lambda i: (0, 0)),
                pl.BlockSpec((1, D_H1_P), lambda i: (0, 0)),
                pl.BlockSpec((D_H1_P, D_H2), lambda i: (0, 0)),
                pl.BlockSpec((1, D_H2), lambda i: (0, 0)),
                pl.BlockSpec((D_H2, enc_p), lambda i: (0, 0)),
                pl.BlockSpec((1, enc_p), lambda i: (0, 0)),
            ],
            out_specs=pl.BlockSpec((tb, enc_p), lambda i: (i, 0)),
        ),
        compiler_params=pltpu.CompilerParams(
            dimension_semantics=("parallel",),
            vmem_limit_bytes=32 * 1024 * 1024,   # v5e default is only 16 MiB
        ),
    )(x, w1p, b1p, w2p, b2p, w3p, b3p)

    # Slice away batch padding and output lane padding (padded cols are 0).
    return out[:B, :enc]


def init_params(key, encoding_dim):
    """Deterministic init. Weights returned already transposed to (in, out)."""
    ks = jax.random.split(key, 6)

    def linear(kw, kb, fan_in, fan_out):
        # torch.nn.Linear default: U(-1/sqrt(fan_in), 1/sqrt(fan_in))
        bound = 1.0 / jnp.sqrt(fan_in)
        w = jax.random.uniform(kw, (fan_in, fan_out), jnp.float32, -bound, bound)
        b = jax.random.uniform(kb, (fan_out,), jnp.float32, -bound, bound)
        return w, b

    w1, b1 = linear(ks[0], ks[1], D_IN, D_H1)
    w2, b2 = linear(ks[2], ks[3], D_H1, D_H2)
    w3, b3 = linear(ks[4], ks[5], D_H2, encoding_dim)
    return (w1, b1, w2, b2, w3, b3)


def reference_forward(x_nchw, params):
    """Pure-f32 JAX reference (matches the PyTorch forward)."""
    w1, b1, w2, b2, w3, b3 = params
    x = x_nchw.reshape(x_nchw.shape[0], -1)
    h = jnp.maximum(x @ w1 + b1, 0.0)
    h = jnp.maximum(h @ w2 + b2, 0.0)
    return jnp.maximum(h @ w3 + b3, 0.0)


if __name__ == "__main__":
    encoding_dim = 32
    batch = 8

    key = jax.random.PRNGKey(0)
    kx, kp = jax.random.split(key)
    x = jax.random.normal(kx, (batch, 1, 28, 28), dtype=jnp.float32)  # NCHW
    params = init_params(kp, encoding_dim)

    # Pack weights once (cast+pad), then jit the forward so the flatten /
    # batch-pad / final slice fuse around the Pallas call.
    packed, enc = prepack_params(params)
    fwd = jax.jit(functools.partial(encoder_forward, enc=enc))

    out = jax.block_until_ready(fwd(x, packed))

    ref = reference_forward(x, params)
    assert out.shape == (batch, encoding_dim)
    # bf16 matmul operands (f32 accumulation) => relaxed tolerance vs f32 ref.
    assert jnp.allclose(out, ref, atol=3e-2, rtol=3e-2), "mismatch vs JAX reference"

    print("KERNEL_OK")
</pallas_src>

<mosaic_0001>
module attributes {stable_mosaic.version = 11 : i64} {
  func.func @encoder_kernel(%arg0: i32, %arg1: memref<8x784xf32, #tpu.memory_space<vmem>>, %arg2: memref<784x512xbf16, #tpu.memory_space<vmem>>, %arg3: memref<1x512xf32, #tpu.memory_space<vmem>>, %arg4: memref<512x256xbf16, #tpu.memory_space<vmem>>, %arg5: memref<1x256xf32, #tpu.memory_space<vmem>>, %arg6: memref<256x128xbf16, #tpu.memory_space<vmem>>, %arg7: memref<1x128xf32, #tpu.memory_space<vmem>>, %arg8: memref<8x128xf32, #tpu.memory_space<vmem>>) attributes {dimension_semantics = [#tpu.dimension_semantics<parallel>], iteration_bounds = array<i64: 1>, scalar_prefetch = 0 : i64, scratch_operands = 0 : i64, tpu.core_type = #tpu.core_type<tc>, window_params = [{transform_indices = @transform_0, window_bounds = array<i64: 8, 784>}, {pipeline_mode = #tpu.pipeline_mode<synchronous>, transform_indices = @transform_1, window_bounds = array<i64: 784, 512>}, {pipeline_mode = #tpu.pipeline_mode<synchronous>, transform_indices = @transform_2, window_bounds = array<i64: 1, 512>}, {pipeline_mode = #tpu.pipeline_mode<synchronous>, transform_indices = @transform_3, window_bounds = array<i64: 512, 256>}, {pipeline_mode = #tpu.pipeline_mode<synchronous>, transform_indices = @transform_4, window_bounds = array<i64: 1, 256>}, {pipeline_mode = #tpu.pipeline_mode<synchronous>, transform_indices = @transform_5, window_bounds = array<i64: 256, 128>}, {pipeline_mode = #tpu.pipeline_mode<synchronous>, transform_indices = @transform_6, window_bounds = array<i64: 1, 128>}, {transform_indices = @transform_7, window_bounds = array<i64: 8, 128>}]} {
    %c0 = arith.constant 0 : index
    %c0_0 = arith.constant 0 : index
    %0 = vector.load %arg1[%c0, %c0_0] : memref<8x784xf32, #tpu.memory_space<vmem>>, vector<8x784xf32>
    %1 = arith.truncf %0 : vector<8x784xf32> to vector<8x784xbf16>
    %c0_1 = arith.constant 0 : index
    %c0_2 = arith.constant 0 : index
    %2 = vector.load %arg2[%c0_1, %c0_2] : memref<784x512xbf16, #tpu.memory_space<vmem>>, vector<784x512xbf16>
    %cst = arith.constant dense<0.000000e+00> : vector<8x512xf32>
    %3 = tpu.matmul %1, %2, %cst {dimension_numbers = #tpu.dot_dimension_numbers<[1], [0], [0], [1], [0, 0, 1, 1], [], []>} : vector<8x784xbf16>, vector<784x512xbf16>, vector<8x512xf32> -> vector<8x512xf32>
    %c0_3 = arith.constant 0 : index
    %c0_4 = arith.constant 0 : index
    %4 = vector.load %arg3[%c0_3, %c0_4] : memref<1x512xf32, #tpu.memory_space<vmem>>, vector<1x512xf32>
    %5 = vector.broadcast %4 : vector<1x512xf32> to vector<8x512xf32>
    %6 = arith.addf %3, %5 : vector<8x512xf32>
    %cst_5 = arith.constant 0.000000e+00 : f32
    %7 = vector.broadcast %cst_5 : f32 to vector<8x512xf32>
    %8 = arith.maximumf %6, %7 : vector<8x512xf32>
    %9 = arith.truncf %8 : vector<8x512xf32> to vector<8x512xbf16>
    %c0_6 = arith.constant 0 : index
    %c0_7 = arith.constant 0 : index
    %10 = vector.load %arg4[%c0_6, %c0_7] : memref<512x256xbf16, #tpu.memory_space<vmem>>, vector<512x256xbf16>
    %cst_8 = arith.constant dense<0.000000e+00> : vector<8x256xf32>
    %11 = tpu.matmul %9, %10, %cst_8 {dimension_numbers = #tpu.dot_dimension_numbers<[1], [0], [0], [1], [0, 0, 1, 1], [], []>} : vector<8x512xbf16>, vector<512x256xbf16>, vector<8x256xf32> -> vector<8x256xf32>
    %c0_9 = arith.constant 0 : index
    %c0_10 = arith.constant 0 : index
    %12 = vector.load %arg5[%c0_9, %c0_10] : memref<1x256xf32, #tpu.memory_space<vmem>>, vector<1x256xf32>
    %13 = vector.broadcast %12 : vector<1x256xf32> to vector<8x256xf32>
    %14 = arith.addf %11, %13 : vector<8x256xf32>
    %cst_11 = arith.constant 0.000000e+00 : f32
    %15 = vector.broadcast %cst_11 : f32 to vector<8x256xf32>
    %16 = arith.maximumf %14, %15 : vector<8x256xf32>
    %17 = arith.truncf %16 : vector<8x256xf32> to vector<8x256xbf16>
    %c0_12 = arith.constant 0 : index
    %c0_13 = arith.constant 0 : index
    %18 = vector.load %arg6[%c0_12, %c0_13] : memref<256x128xbf16, #tpu.memory_space<vmem>>, vector<256x128xbf16>
    %cst_14 = arith.constant dense<0.000000e+00> : vector<8x128xf32>
    %19 = tpu.matmul %17, %18, %cst_14 {dimension_numbers = #tpu.dot_dimension_numbers<[1], [0], [0], [1], [0, 0, 1, 1], [], []>} : vector<8x256xbf16>, vector<256x128xbf16>, vector<8x128xf32> -> vector<8x128xf32>
    %c0_15 = arith.constant 0 : index
    %c0_16 = arith.constant 0 : index
    %20 = vector.load %arg7[%c0_15, %c0_16] : memref<1x128xf32, #tpu.memory_space<vmem>>, vector<1x128xf32>
    %21 = vector.broadcast %20 : vector<1x128xf32> to vector<8x128xf32>
    %22 = arith.addf %19, %21 : vector<8x128xf32>
    %cst_17 = arith.constant 0.000000e+00 : f32
    %23 = vector.broadcast %cst_17 : f32 to vector<8x128xf32>
    %24 = arith.maximumf %22, %23 : vector<8x128xf32>
    %c0_18 = arith.constant 0 : index
    %c0_19 = arith.constant 0 : index
    %25 = vector.load %arg8[%c0_18, %c0_19] : memref<8x128xf32, #tpu.memory_space<vmem>>, vector<8x128xf32>
    tpu.vector_store %arg8[%c0_18, %c0_19], %24 {strides = array<i32>} : memref<8x128xf32, #tpu.memory_space<vmem>>, vector<8x128xf32>,
    return
  }
  func.func @transform_0(%arg0: i32) -> (i32, i32) {
    %c0_i32 = arith.constant 0 : i32
    %c0_i32_0 = arith.constant 0 : i32
    return %arg0, %c0_i32 : i32, i32
  }
  func.func @transform_1(%arg0: i32) -> (i32, i32) {
    %c0_i32 = arith.constant 0 : i32
    %c0_i32_0 = arith.constant 0 : i32
    %c0_i32_1 = arith.constant 0 : i32
    return %c0_i32, %c0_i32_0 : i32, i32
  }
  func.func @transform_2(%arg0: i32) -> (i32, i32) {
    %c0_i32 = arith.constant 0 : i32
    %c0_i32_0 = arith.constant 0 : i32
    %c0_i32_1 = arith.constant 0 : i32
    return %c0_i32, %c0_i32_0 : i32, i32
  }
  func.func @transform_3(%arg0: i32) -> (i32, i32) {
    %c0_i32 = arith.constant 0 : i32
    %c0_i32_0 = arith.constant 0 : i32
    %c0_i32_1 = arith.constant 0 : i32
    return %c0_i32, %c0_i32_0 : i32, i32
  }
  func.func @transform_4(%arg0: i32) -> (i32, i32) {
    %c0_i32 = arith.constant 0 : i32
    %c0_i32_0 = arith.constant 0 : i32
    %c0_i32_1 = arith.constant 0 : i32
    return %c0_i32, %c0_i32_0 : i32, i32
  }
  func.func @transform_5(%arg0: i32) -> (i32, i32) {
    %c0_i32 = arith.constant 0 : i32
    %c0_i32_0 = arith.constant 0 : i32
    %c0_i32_1 = arith.constant 0 : i32
    return %c0_i32, %c0_i32_0 : i32, i32
  }
  func.func @transform_6(%arg0: i32) -> (i32, i32) {
    %c0_i32 = arith.constant 0 : i32
    %c0_i32_0 = arith.constant 0 : i32
    %c0_i32_1 = arith.constant 0 : i32
    return %c0_i32, %c0_i32_0 : i32, i32
  }
  func.func @transform_7(%arg0: i32) -> (i32, i32) {
    %c0_i32 = arith.constant 0 : i32
    %c0_i32_0 = arith.constant 0 : i32
    return %arg0, %c0_i32 : i32, i32
  }
}

</mosaic_0001>

<bundles_post_ra>
// kernel: encoder_forward.1
= control target key start
LH: loop header
LB: loop body
LE: loop exit
PB: predicated region body
PF: predicated region fallthrough
CT: control target
= control target key end

     0   :  { %12 = vsyncpa [#allocation3], 0  ;;  %s3447_s0 = inlined_call_operand.vmem [shape: f32[8,784], index: 0, kind: input, shape index: {}]   ;;  %s3448_s1 = inlined_call_operand.hbm [shape: bf16[784,512], index: 1, kind: input, shape index: {}]   ;;  %s3449_s2 = inlined_call_operand.vmem [shape: f32[1,512], index: 2, kind: input, shape index: {}]   ;;  %s3450_s3 = inlined_call_operand.vmem [shape: bf16[512,256], index: 3, kind: input, shape index: {}]   ;;  %s3451_s4 = inlined_call_operand.vmem [shape: f32[1,256], index: 4, kind: input, shape index: {}]   ;;  %s3452_s5 = inlined_call_operand.vmem [shape: bf16[256,128], index: 5, kind: input, shape index: {}]   ;;  %s3453_s6 = inlined_call_operand.vmem [shape: f32[1,128], index: 6, kind: input, shape index: {}]   ;;  %s3454_s7 = inlined_call_operand.hbm [shape: f32[8,128], index: 7, kind: output, shape index: {}]  }
   0x1   :  { %13 = vsyncpa [#allocation4], 0  ;;  %s3058_s24 = smov [#allocation2]   ;;  %s3010_s28 = scalar_lea.hbm %s3448_s1, 25088 }
   0x2   :  { %s21_s25 = sshll.u32 %s3058_s24, 4  ;;  %p3011_p0 = scmp.ne.s32.totalorder %s3448_s1, %s3010_s28  ;;  %s22_s25 = int_to_ptr.vmem [resolvable:$true] %s21_s25 }
   0x3   :  { %p3014_p1 = scmp.lt.u32.totalorder %s3010_s28, %s3448_s1 }
   0x5   :  { %p3016_p2 = pnand %p3014_p1, %p3011_p0 }
   0x7   :  { %3019 = shalt.err (!%p3016_p2)
}
   0x8   :  { %s3020_s10 = scalar_lea.vmem %s22_s25, 25088  ;;  %p3025_p4 = scmp.lt.s32.totalorder %s22_s25, %s22_s25 }
   0x9   :  { %p3021_p3 = scmp.ne.s32.totalorder %s22_s25, %s3020_s10  ;;  %p3026_p5 = scmp.lt.s32.totalorder %s3020_s10, %s3020_s10 }
   0xb   :  { %p3027_p6 = por %p3026_p5, %p3025_p4 }
   0xd   :  { %p3028_p7 = pnand %p3027_p6, %p3021_p3 }
   0xf   :  { %3031 = shalt.err (!%p3028_p7)
}
  0x10   :  { %s3059_s11 = smov 256   ;;  %s3060_s12 = smov 16  }
  0x11   :  { %27 = dma.hbm_to_vmem [thread:$0]  %s3448_s1, 25088, %s22_s25, [#allocation3], %s3059_s11, %s3059_s11, %s3060_s12  }
  0x12   :  { %3054 = dma.done.wait [#allocation3], 25088  }
  0x13   :  { %3055 = vsyncadd [#allocation3], 4294942208  ;;  %v2604_v0 = vld [vmem:[#allocation2 + $0x4] ss:$16 sps:$4 sm:$0xff]   ;;  %v2608_v2 = vld [vmem:[#allocation2] ss:$16 sps:$4 sm:$0xff]  }
  0x14   :  { %v2606_v1 = vld [vmem:[#allocation2 + $0x204] ss:$16 sps:$4 sm:$0xff]   ;;  %1258 = vmatprep.subr.bf16.mxu1 %v2604_v0  ;;  %v2609_v3 = vld [vmem:[#allocation2 + $0x200] ss:$16 sps:$4 sm:$0xff]   ;;  %v43_v46 = vld [vmem:[%s3447_s0 + $0x8] sm:$0xff]  ;;  %vm1254_vm0 = vcmask 130048  }
  0x15   :  { %1299 = vmatprep.subr.bf16.mxu0 %v2606_v1  ;;  %v2610_v4 = vld [vmem:[#allocation2 + $0x24] ss:$16 sps:$4 sm:$0xff]   ;;  %1259 = vmatpush1.bf16.msra.mxu1 %v2608_v2  ;;  %v2614_v6 = vld [vmem:[#allocation2 + $0x20] ss:$16 sps:$4 sm:$0xff]   ;;  %v3118_v48 = vpack.c.bf16 %v43_v46, %v43_v46  ;;  %v45_v49 = vld [vmem:[%s3447_s0 + $0x18] sm:$0xff]  ;;  %s3062_s13 = smov [#allocation5]  }
  0x16   :  { %1300 = vmatpush1.bf16.msra.mxu0 %v2609_v3  ;;  %v2612_v5 = vld [vmem:[#allocation2 + $0x224] ss:$16 sps:$4 sm:$0xff]   ;;  %1260 = vmatprep.subr.bf16.mxu1 %v2610_v4  ;;  %v2615_v7 = vld [vmem:[#allocation2 + $0x220] ss:$16 sps:$4 sm:$0xff]   ;;  %v3123_v52 = vpack.c.bf16 %v45_v49, %v45_v49  ;;  %v2757_v49 = vld [vmem:[#allocation2 + $0x128] ss:$16 sps:$4 sm:$0xff]  }
  0x17   :  { %1301 = vmatprep.subr.bf16.mxu0 %v2612_v5  ;;  %v2616_v8 = vld [vmem:[#allocation2 + $0x44] ss:$16 sps:$4 sm:$0xff]   ;;  %v2620_v10 = vld [vmem:[#allocation2 + $0x40] ss:$16 sps:$4 sm:$0xff]   ;;  %1290 = vmatprep.mubr.bf16.mxu1 %v3118_v48  ;;  %s2259_s14 = sshll.u32 %s3062_s13, 4  ;;  %s2260_s14 = int_to_ptr.vmem [resolvable:$true] %s2259_s14 }
  0x18   :  { %v2618_v9 = vld [vmem:[#allocation2 + $0x244] ss:$16 sps:$4 sm:$0xff]   ;;  %v2621_v11 = vld [vmem:[#allocation2 + $0x240] ss:$16 sps:$4 sm:$0xff]   ;;  %1331 = vmatprep.mubr.bf16.mxu0 %v3123_v52  ;;  %s3032_s1 = scalar_lea.vmem %s2260_s14, 128  ;;  %p3037_p9 = scmp.lt.s32.totalorder %s2260_s14, %s2260_s14 }
  0x19   :  { %1261 = vmatpush1.bf16.msra.mxu1 %v2614_v6  ;;  %v2622_v12 = vld [vmem:[#allocation2 + $0x64] ss:$16 sps:$4 sm:$0xff]   ;;  %v2626_v14 = vld [vmem:[#allocation2 + $0x60] ss:$16 sps:$4 sm:$0xff]   ;;  %p3033_p8 = scmp.ne.s32.totalorder %s2260_s14, %s3032_s1  ;;  %p3038_p10 = scmp.lt.s32.totalorder %s3032_s1, %s3032_s1 }
  0x1a   :  { %1302 = vmatpush1.bf16.msra.mxu0 %v2615_v7  ;;  %1262 = vmatprep.subr.bf16.mxu1 %v2616_v8  ;;  %v2624_v13 = vld [vmem:[#allocation2 + $0x264] ss:$16 sps:$4 sm:$0xff]   ;;  %v2627_v15 = vld [vmem:[#allocation2 + $0x260] ss:$16 sps:$4 sm:$0xff]   ;;  %v2705_v7 = vld [vmem:[#allocation2 + $0xc] ss:$16 sps:$4 sm:$0xff]  }
  0x1b   :  { %1303 = vmatprep.subr.bf16.mxu0 %v2618_v9  ;;  %v2628_v16 = vld [vmem:[#allocation2 + $0x84] ss:$16 sps:$4 sm:$0xff]   ;;  %v2632_v18 = vld [vmem:[#allocation2 + $0x80] ss:$16 sps:$4 sm:$0xff]   ;;  %p3039_p11 = por %p3038_p10, %p3037_p9 }
  0x1c   :  { %v2630_v17 = vld [vmem:[#allocation2 + $0x284] ss:$16 sps:$4 sm:$0xff]   ;;  %v2633_v19 = vld [vmem:[#allocation2 + $0x280] ss:$16 sps:$4 sm:$0xff]  }
  0x1d   :  { %1263 = vmatpush1.bf16.msra.mxu1 %v2620_v10  ;;  %v2634_v20 = vld [vmem:[#allocation2 + $0xa4] ss:$16 sps:$4 sm:$0xff]   ;;  %v2638_v22 = vld [vmem:[#allocation2 + $0xa0] ss:$16 sps:$4 sm:$0xff]   ;;  %v2703_v10 = vld [vmem:[#allocation2 + $0x8] ss:$16 sps:$4 sm:$0xff]   ;;  %p3040_p12 = pnand %p3039_p11, %p3033_p8 }
  0x1e   :  { %1304 = vmatpush1.bf16.msra.mxu0 %v2621_v11  ;;  %1264 = vmatprep.subr.bf16.mxu1 %v2622_v12  ;;  %v2636_v21 = vld [vmem:[#allocation2 + $0x2a4] ss:$16 sps:$4 sm:$0xff]   ;;  %v2639_v23 = vld [vmem:[#allocation2 + $0x2a0] ss:$16 sps:$4 sm:$0xff]  }
  0x1f   :  { %1305 = vmatprep.subr.bf16.mxu0 %v2624_v13  ;;  %v2640_v24 = vld [vmem:[#allocation2 + $0xc4] ss:$16 sps:$4 sm:$0xff]   ;;  %v2644_v26 = vld [vmem:[#allocation2 + $0xc0] ss:$16 sps:$4 sm:$0xff]   ;;  %v2711_v13 = vld [vmem:[#allocation2 + $0x2c] ss:$16 sps:$4 sm:$0xff]  }
  0x20   :  { %v2642_v25 = vld [vmem:[#allocation2 + $0x2c4] ss:$16 sps:$4 sm:$0xff]   ;;  %v2645_v27 = vld [vmem:[#allocation2 + $0x2c0] ss:$16 sps:$4 sm:$0xff]  }
  0x21   :  { %1265 = vmatpush1.bf16.msra.mxu1 %v2626_v14  ;;  %v2646_v28 = vld [vmem:[#allocation2 + $0xe4] ss:$16 sps:$4 sm:$0xff]   ;;  %v2650_v30 = vld [vmem:[#allocation2 + $0xe0] ss:$16 sps:$4 sm:$0xff]  }
  0x22   :  { %1306 = vmatpush1.bf16.msra.mxu0 %v2627_v15  ;;  %1266 = vmatprep.subr.bf16.mxu1 %v2628_v16  ;;  %v2648_v29 = vld [vmem:[#allocation2 + $0x2e4] ss:$16 sps:$4 sm:$0xff]   ;;  %v2651_v31 = vld [vmem:[#allocation2 + $0x2e0] ss:$16 sps:$4 sm:$0xff]   ;;  %v2709_v15 = vld [vmem:[#allocation2 + $0x28] ss:$16 sps:$4 sm:$0xff]  }
  0x23   :  { %1307 = vmatprep.subr.bf16.mxu0 %v2630_v17  ;;  %v2652_v32 = vld [vmem:[#allocation2 + $0x104] ss:$16 sps:$4 sm:$0xff]   ;;  %v2656_v34 = vld [vmem:[#allocation2 + $0x100] ss:$16 sps:$4 sm:$0xff]   ;;  %v2717_v17 = vld [vmem:[#allocation2 + $0x4c] ss:$16 sps:$4 sm:$0xff]  }
  0x24   :  { %v2654_v33 = vld [vmem:[#allocation2 + $0x304] ss:$16 sps:$4 sm:$0xff]   ;;  %v2657_v35 = vld [vmem:[#allocation2 + $0x300] ss:$16 sps:$4 sm:$0xff]  }
  0x25   :  { %1267 = vmatpush1.bf16.msra.mxu1 %v2632_v18  ;;  %v2658_v36 = vld [vmem:[#allocation2 + $0x124] ss:$16 sps:$4 sm:$0xff]   ;;  %v2662_v38 = vld [vmem:[#allocation2 + $0x120] ss:$16 sps:$4 sm:$0xff]  }
  0x26   :  { %1308 = vmatpush1.bf16.msra.mxu0 %v2633_v19  ;;  %1268 = vmatprep.subr.bf16.mxu1 %v2634_v20  ;;  %v2660_v37 = vld [vmem:[#allocation2 + $0x324] ss:$16 sps:$4 sm:$0xff]   ;;  %v2663_v39 = vld [vmem:[#allocation2 + $0x320] ss:$16 sps:$4 sm:$0xff]   ;;  %v2715_v19 = vld [vmem:[#allocation2 + $0x48] ss:$16 sps:$4 sm:$0xff]  }
  0x27   :  { %1309 = vmatprep.subr.bf16.mxu0 %v2636_v21  ;;  %v2664_v40 = vld [vmem:[#allocation2 + $0x144] ss:$16 sps:$4 sm:$0xff]   ;;  %v2668_v42 = vld [vmem:[#allocation2 + $0x140] ss:$16 sps:$4 sm:$0xff]   ;;  %v2723_v21 = vld [vmem:[#allocation2 + $0x6c] ss:$16 sps:$4 sm:$0xff]  }
  0x28   :  { %v2666_v41 = vld [vmem:[#allocation2 + $0x344] ss:$16 sps:$4 sm:$0xff]   ;;  %v2669_v43 = vld [vmem:[#allocation2 + $0x340] ss:$16 sps:$4 sm:$0xff]  }
  0x29   :  { %1269 = vmatpush1.bf16.msra.mxu1 %v2638_v22  ;;  %v2670_v44 = vld [vmem:[#allocation2 + $0x164] ss:$16 sps:$4 sm:$0xff]   ;;  %v2674_v47 = vld [vmem:[#allocation2 + $0x160] ss:$16 sps:$4 sm:$0xff]  }
  0x2a   :  { %1310 = vmatpush1.bf16.msra.mxu0 %v2639_v23  ;;  %1270 = vmatprep.subr.bf16.mxu1 %v2640_v24  ;;  %v2672_v45 = vld [vmem:[#allocation2 + $0x364] ss:$16 sps:$4 sm:$0xff]   ;;  %v2675_v50 = vld [vmem:[#allocation2 + $0x360] ss:$16 sps:$4 sm:$0xff]   ;;  %v2721_v23 = vld [vmem:[#allocation2 + $0x68] ss:$16 sps:$4 sm:$0xff]  }
  0x2b   :  { %1311 = vmatprep.subr.bf16.mxu0 %v2642_v25  ;;  %v2676_v51 = vld [vmem:[#allocation2 + $0x184] ss:$16 sps:$4 sm:$0xff]   ;;  %v2680_v54 = vld [vmem:[#allocation2 + $0x180] ss:$16 sps:$4 sm:$0xff]   ;;  %v2729_v25 = vld [vmem:[#allocation2 + $0x8c] ss:$16 sps:$4 sm:$0xff]  }
  0x2c   :  { %v2678_v53 = vld [vmem:[#allocation2 + $0x384] ss:$16 sps:$4 sm:$0xff]   ;;  %v2681_v55 = vld [vmem:[#allocation2 + $0x380] ss:$16 sps:$4 sm:$0xff]  }
  0x2d   :  { %1271 = vmatpush1.bf16.msra.mxu1 %v2644_v26  ;;  %v2682_v56 = vld [vmem:[#allocation2 + $0x1a4] ss:$16 sps:$4 sm:$0xff]   ;;  %v2686_v58 = vld [vmem:[#allocation2 + $0x1a0] ss:$16 sps:$4 sm:$0xff]  }
  0x2e   :  { %1312 = vmatpush1.bf16.msra.mxu0 %v2645_v27  ;;  %1272 = vmatprep.subr.bf16.mxu1 %v2646_v28  ;;  %v2684_v57 = vld [vmem:[#allocation2 + $0x3a4] ss:$16 sps:$4 sm:$0xff]   ;;  %v2687_v59 = vld [vmem:[#allocation2 + $0x3a0] ss:$16 sps:$4 sm:$0xff]   ;;  %v2727_v27 = vld [vmem:[#allocation2 + $0x88] ss:$16 sps:$4 sm:$0xff]  }
  0x2f   :  { %1313 = vmatprep.subr.bf16.mxu0 %v2648_v29  ;;  %v2688_v60 = vld [vmem:[#allocation2 + $0x1c4] ss:$16 sps:$4 sm:$0xff]   ;;  %v2692_v62 = vld [vmem:[#allocation2 + $0x1c0] ss:$16 sps:$4 sm:$0xff]   ;;  %v2735_v29 = vld [vmem:[#allocation2 + $0xac] ss:$16 sps:$4 sm:$0xff]  }
  0x30   :  { %v2690_v61 = vld [vmem:[#allocation2 + $0x3c4] ss:$16 sps:$4 sm:$0xff]   ;;  %v2693_v63 = vld [vmem:[#allocation2 + $0x3c0] ss:$16 sps:$4 sm:$0xff]  }
  0x31   :  { %1273 = vmatpush1.bf16.msra.mxu1 %v2650_v30  ;;  %v2694_v0 = vld [vmem:[#allocation2 + $0x1e4] ss:$16 sps:$4 sm:$0xff]   ;;  %v2698_v2 = vld [vmem:[#allocation2 + $0x1e0] ss:$16 sps:$4 sm:$0xff]  }
  0x32   :  { %1314 = vmatpush1.bf16.msra.mxu0 %v2651_v31  ;;  %1274 = vmatprep.subr.bf16.mxu1 %v2652_v32  ;;  %v2696_v1 = vld [vmem:[#allocation2 + $0x3e4] ss:$16 sps:$4 sm:$0xff]   ;;  %v2699_v3 = vld [vmem:[#allocation2 + $0x3e0] ss:$16 sps:$4 sm:$0xff]   ;;  %v2733_v31 = vld [vmem:[#allocation2 + $0xa8] ss:$16 sps:$4 sm:$0xff]  }
  0x33   :  { %1315 = vmatprep.subr.bf16.mxu0 %v2654_v33  ;;  %v42_v4 = vld [vmem:[%s3447_s0] sm:$0xff]  ;;  %v44_v6 = vld [vmem:[%s3447_s0 + $0x10] sm:$0xff]  ;;  %v2741_v33 = vld [vmem:[#allocation2 + $0xcc] ss:$16 sps:$4 sm:$0xff]  }
  0x34   :  { %v2702_v5 = vld [vmem:[#allocation2 + $0x404] ss:$16 sps:$4 sm:$0xff]   ;;  %v3133_v8 = vpack.c.bf16 %v42_v4, %v42_v4  ;;  %v2700_v9 = vld [vmem:[#allocation2 + $0x400] ss:$16 sps:$4 sm:$0xff]   ;;  %v3135_v11 = vpack.c.bf16 %v44_v6, %v44_v6  ;;  %v2789_v4 = vld [vmem:[#allocation2 + $0x1cc] ss:$16 sps:$4 sm:$0xff]  }
  0x35   :  { %1275 = vmatpush1.bf16.msra.mxu1 %v2656_v34  ;;  %v2708_v12 = vld [vmem:[#allocation2 + $0x424] ss:$16 sps:$4 sm:$0xff]   ;;  %v2706_v14 = vld [vmem:[#allocation2 + $0x420] ss:$16 sps:$4 sm:$0xff]   ;;  %v47_v34 = vld [vmem:[%s3447_s0 + $0x28] sm:$0xff] }
  0x36   :  { %1316 = vmatpush1.bf16.msra.mxu0 %v2657_v35  ;;  %1276 = vmatprep.subr.bf16.mxu1 %v2658_v36  ;;  %v2714_v16 = vld [vmem:[#allocation2 + $0x444] ss:$16 sps:$4 sm:$0xff]   ;;  %v2712_v18 = vld [vmem:[#allocation2 + $0x440] ss:$16 sps:$4 sm:$0xff]   ;;  %v3143_v35 = vpack.c.bf16 %v47_v34, %v47_v34  ;;  %v2787_v6 = vld [vmem:[#allocation2 + $0x1c8] ss:$16 sps:$4 sm:$0xff]  }
  0x37   :  { %1317 = vmatprep.subr.bf16.mxu0 %v2660_v37  ;;  %v2720_v20 = vld [vmem:[#allocation2 + $0x464] ss:$16 sps:$4 sm:$0xff]   ;;  %v2718_v22 = vld [vmem:[#allocation2 + $0x460] ss:$16 sps:$4 sm:$0xff]   ;;  %v2739_v37 = vld [vmem:[#allocation2 + $0xc8] ss:$16 sps:$4 sm:$0xff]  }
  0x38   :  { %v2726_v24 = vld [vmem:[#allocation2 + $0x484] ss:$16 sps:$4 sm:$0xff]   ;;  %v2724_v26 = vld [vmem:[#allocation2 + $0x480] ss:$16 sps:$4 sm:$0xff]   ;;  %v2822_v34 = vld [vmem:[#allocation2 + $0x2ec] ss:$16 sps:$4 sm:$0xff]  }
  0x39   :  { %1277 = vmatpush1.bf16.msra.mxu1 %v2662_v38  ;;  %v2732_v28 = vld [vmem:[#allocation2 + $0x4a4] ss:$16 sps:$4 sm:$0xff]   ;;  %v2730_v30 = vld [vmem:[#allocation2 + $0x4a0] ss:$16 sps:$4 sm:$0xff]  }
  0x3a   :  { %1318 = vmatpush1.bf16.msra.mxu0 %v2663_v39  ;;  %1278 = vmatprep.subr.bf16.mxu1 %v2664_v40  ;;  %v2738_v32 = vld [vmem:[#allocation2 + $0x4c4] ss:$16 sps:$4 sm:$0xff]   ;;  %v2736_v36 = vld [vmem:[#allocation2 + $0x4c0] ss:$16 sps:$4 sm:$0xff]   ;;  %v2747_v39 = vld [vmem:[#allocation2 + $0xec] ss:$16 sps:$4 sm:$0xff]  }
  0x3b   :  { %1319 = vmatprep.subr.bf16.mxu0 %v2666_v41  ;;  %v2744_v38 = vld [vmem:[#allocation2 + $0x4e4] ss:$16 sps:$4 sm:$0xff]   ;;  %v2742_v40 = vld [vmem:[#allocation2 + $0x4e0] ss:$16 sps:$4 sm:$0xff]   ;;  %v2745_v41 = vld [vmem:[#allocation2 + $0xe8] ss:$16 sps:$4 sm:$0xff]  }
  0x3c   :  { %v2756_v46 = vld [vmem:[#allocation2 + $0x524] ss:$16 sps:$4 sm:$0xff]  }
  0x3d   :  { %1279 = vmatpush1.bf16.msra.mxu1 %v2668_v42  ;;  %v2750_v42 = vld [vmem:[#allocation2 + $0x504] ss:$16 sps:$4 sm:$0xff]  }
  0x3e   :  { %1320 = vmatpush1.bf16.msra.mxu0 %v2669_v43  ;;  %1280 = vmatprep.subr.bf16.mxu1 %v2670_v44  ;;  %v2753_v43 = vld [vmem:[#allocation2 + $0x10c] ss:$16 sps:$4 sm:$0xff]   ;;  %v2748_v44 = vld [vmem:[#allocation2 + $0x500] ss:$16 sps:$4 sm:$0xff]  }
  0x3f   :  { %1321 = vmatprep.subr.bf16.mxu0 %v2672_v45  ;;  %v2751_v45 = vld [vmem:[#allocation2 + $0x108] ss:$16 sps:$4 sm:$0xff]  }
  0x41   :  { %1281 = vmatpush1.bf16.msra.mxu1 %v2674_v47  ;;  %v2759_v47 = vld [vmem:[#allocation2 + $0x12c] ss:$16 sps:$4 sm:$0xff]  }
  0x42   :  { %1322 = vmatpush1.bf16.msra.mxu0 %v2675_v50  ;;  %1282 = vmatprep.subr.bf16.mxu1 %v2676_v51  ;;  %v2762_v50 = vld [vmem:[#allocation2 + $0x544] ss:$16 sps:$4 sm:$0xff]   ;;  %v2765_v51 = vld [vmem:[#allocation2 + $0x14c] ss:$16 sps:$4 sm:$0xff]  }
  0x43   :  { %1323 = vmatprep.subr.bf16.mxu0 %v2678_v53  ;;  %v2760_v53 = vld [vmem:[#allocation2 + $0x540] ss:$16 sps:$4 sm:$0xff]  }
  0x45   :  { %1283 = vmatpush1.bf16.msra.mxu1 %v2680_v54  ;;  %v2763_v54 = vld [vmem:[#allocation2 + $0x148] ss:$16 sps:$4 sm:$0xff]  }
  0x46   :  { %1324 = vmatpush1.bf16.msra.mxu0 %v2681_v55  ;;  %1284 = vmatprep.subr.bf16.mxu1 %v2682_v56  ;;  %v2768_v55 = vld [vmem:[#allocation2 + $0x564] ss:$16 sps:$4 sm:$0xff]   ;;  %v2771_v56 = vld [vmem:[#allocation2 + $0x16c] ss:$16 sps:$4 sm:$0xff]  }
  0x47   :  { %1325 = vmatprep.subr.bf16.mxu0 %v2684_v57  ;;  %v2766_v57 = vld [vmem:[#allocation2 + $0x560] ss:$16 sps:$4 sm:$0xff]  }
  0x49   :  { %1285 = vmatpush1.bf16.msra.mxu1 %v2686_v58  ;;  %v2769_v58 = vld [vmem:[#allocation2 + $0x168] ss:$16 sps:$4 sm:$0xff]  }
  0x4a   :  { %1326 = vmatpush1.bf16.msra.mxu0 %v2687_v59  ;;  %1286 = vmatprep.subr.bf16.mxu1 %v2688_v60  ;;  %v2774_v59 = vld [vmem:[#allocation2 + $0x584] ss:$16 sps:$4 sm:$0xff]   ;;  %v2777_v60 = vld [vmem:[#allocation2 + $0x18c] ss:$16 sps:$4 sm:$0xff]  }
  0x4b   :  { %1327 = vmatprep.subr.bf16.mxu0 %v2690_v61  ;;  %v2772_v61 = vld [vmem:[#allocation2 + $0x580] ss:$16 sps:$4 sm:$0xff]  }
  0x4d   :  { %1287 = vmatpush1.bf16.msra.mxu1 %v2692_v62  ;;  %v2775_v62 = vld [vmem:[#allocation2 + $0x188] ss:$16 sps:$4 sm:$0xff]  }
  0x4e   :  { %1328 = vmatpush1.bf16.msra.mxu0 %v2693_v63  ;;  %1288 = vmatprep.subr.bf16.mxu1 %v2694_v0  ;;  %v2780_v63 = vld [vmem:[#allocation2 + $0x5a4] ss:$16 sps:$4 sm:$0xff]   ;;  %v2783_v0 = vld [vmem:[#allocation2 + $0x1ac] ss:$16 sps:$4 sm:$0xff]  }
  0x4f   :  { %1329 = vmatprep.subr.bf16.mxu0 %v2696_v1  ;;  %v2778_v1 = vld [vmem:[#allocation2 + $0x5a0] ss:$16 sps:$4 sm:$0xff]  }
  0x51   :  { %1289 = vmatpush1.bf16.msra.mxu1 %v2698_v2  ;;  %v2781_v2 = vld [vmem:[#allocation2 + $0x1a8] ss:$16 sps:$4 sm:$0xff]  }
  0x52   :  { %1330 = vmatpush1.bf16.msra.mxu0 %v2699_v3  ;;  %1422 = vmatprep.subr.bf16.mxu1 %v2705_v7  ;;  %v2786_v3 = vld [vmem:[#allocation2 + $0x5c4] ss:$16 sps:$4 sm:$0xff]  }
  0x53   :  { %1340 = vmatprep.subr.bf16.mxu0 %v2702_v5  ;;  %v2784_v5 = vld [vmem:[#allocation2 + $0x5c0] ss:$16 sps:$4 sm:$0xff]   ;;  %v2792_v7 = vld [vmem:[#allocation2 + $0x5e4] ss:$16 sps:$4 sm:$0xff]  }
  0x54   :  { %1291 = vmatmul.mubr.bf16.vlgmr.msra.gmra.mrb[0].mxu1 %v3133_v8 }
  0x55   :  { %1332 = vmatmul.mubr.bf16.vlgmr.msra.gmra.mrb[0].mxu0 %v3135_v11  ;;  %1423 = vmatpush1.bf16.msra.mxu1 %v2703_v10  ;;  %v2790_v10 = vld [vmem:[#allocation2 + $0x5e0] ss:$16 sps:$4 sm:$0xff]  }
  0x56   :  { %1341 = vmatpush1.bf16.msra.mxu0 %v2700_v9  ;;  %1424 = vmatprep.subr.bf16.mxu1 %v2711_v13  ;;  %v2795_v9 = vld [vmem:[#allocation2 + $0x1ec] ss:$16 sps:$4 sm:$0xff]   ;;  %v46_v13 = vld [vmem:[%s3447_s0 + $0x20] sm:$0xff] }
  0x57   :  { %1342 = vmatprep.subr.bf16.mxu0 %v2708_v12  ;;  %1454 = vmatprep.mubr.bf16.mxu1 %v3118_v48  ;;  %v2754_v48 = vld [vmem:[#allocation2 + $0x520] ss:$16 sps:$4 sm:$0xff]   ;;  %v2793_v12 = vld [vmem:[#allocation2 + $0x1e8] ss:$16 sps:$4 sm:$0xff]  }
  0x58   :  { %1372 = vmatprep.mubr.bf16.mxu0 %v3143_v35 }
  0x59   :  { %1425 = vmatpush1.bf16.msra.mxu1 %v2709_v15  ;;  %v2804_v15 = vld [vmem:[#allocation2 + $0x604] ss:$16 sps:$4 sm:$0xff]  }
  0x5a   :  { %1343 = vmatpush1.bf16.msra.mxu0 %v2706_v14  ;;  %1426 = vmatprep.subr.bf16.mxu1 %v2717_v17  ;;  %v2798_v14 = vld [vmem:[#allocation2 + $0x20c] ss:$16 sps:$4 sm:$0xff]   ;;  %v2796_v17 = vld [vmem:[#allocation2 + $0x208] ss:$16 sps:$4 sm:$0xff]  }
  0x5b   :  { %1344 = vmatprep.subr.bf16.mxu0 %v2714_v16  ;;  %v3149_v16 = vpack.c.bf16 %v46_v13, %v46_v13  ;;  %v2930_v13 = vld [vmem:[%s3450_s3 + $0xa4] ss:$8 sps:$4 sm:$0xff]  }
  0x5d   :  { %1427 = vmatpush1.bf16.msra.mxu1 %v2715_v19  ;;  %v2801_v19 = vld [vmem:[#allocation2 + $0x22c] ss:$16 sps:$4 sm:$0xff]  }
  0x5e   :  { %1345 = vmatpush1.bf16.msra.mxu0 %v2712_v18  ;;  %1428 = vmatprep.subr.bf16.mxu1 %v2723_v21  ;;  %v2802_v18 = vld [vmem:[#allocation2 + $0x600] ss:$16 sps:$4 sm:$0xff]   ;;  %v2799_v21 = vld [vmem:[#allocation2 + $0x228] ss:$16 sps:$4 sm:$0xff]  }
  0x5f   :  { %1346 = vmatprep.subr.bf16.mxu0 %v2720_v20  ;;  %v2894_v20 = vld [vmem:[#allocation2 + $0x60c] ss:$16 sps:$4 sm:$0xff]  }
  0x61   :  { %1429 = vmatpush1.bf16.msra.mxu1 %v2721_v23  ;;  %v3061_v23 = vmov 0  }
  0x62   :  { %1347 = vmatpush1.bf16.msra.mxu0 %v2718_v22  ;;  %1430 = vmatprep.subr.bf16.mxu1 %v2729_v25  ;;  %v2807_v22 = vld [vmem:[#allocation2 + $0x24c] ss:$16 sps:$4 sm:$0xff]   ;;  %v48_v25 = vld [vmem:[%s3447_s0 + $0x30] sm:$0xff] }
  0x63   :  { %1348 = vmatprep.subr.bf16.mxu0 %v2726_v24  ;;  %v2805_v24 = vld [vmem:[#allocation2 + $0x248] ss:$16 sps:$4 sm:$0xff]  }
  0x65   :  { %1431 = vmatpush1.bf16.msra.mxu1 %v2727_v27  ;;  %v2892_v27 = vld [vmem:[#allocation2 + $0x608] ss:$16 sps:$4 sm:$0xff]  }
  0x66   :  { %1349 = vmatpush1.bf16.msra.mxu0 %v2724_v26  ;;  %1432 = vmatprep.subr.bf16.mxu1 %v2735_v29  ;;  %v2810_v26 = vld [vmem:[#allocation2 + $0x26c] ss:$16 sps:$4 sm:$0xff]  }
  0x67   :  { %1350 = vmatprep.subr.bf16.mxu0 %v2732_v28  ;;  %v55_v28 = vpack.c.bf16 %v48_v25, %v48_v25  ;;  %v2813_v29 = vld [vmem:[#allocation2 + $0x28c] ss:$16 sps:$4 sm:$0xff]   ;;  %v2856_v25 = vld [vmem:[#allocation2 + $0x468] ss:$16 sps:$4 sm:$0xff]  }
  0x69   :  { %1433 = vmatpush1.bf16.msra.mxu1 %v2733_v31  ;;  %v2816_v31 = vld [vmem:[#allocation2 + $0x2ac] ss:$16 sps:$4 sm:$0xff]  }
  0x6a   :  { %1351 = vmatpush1.bf16.msra.mxu0 %v2730_v30  ;;  %1434 = vmatprep.subr.bf16.mxu1 %v2741_v33  ;;  %v2811_v30 = vld [vmem:[#allocation2 + $0x288] ss:$16 sps:$4 sm:$0xff]  }
  0x6b   :  { %1352 = vmatprep.subr.bf16.mxu0 %v2738_v32  ;;  %v2814_v32 = vld [vmem:[#allocation2 + $0x2a8] ss:$16 sps:$4 sm:$0xff]  }
  0x6c   :  { %v2817_v33 = vld [vmem:[#allocation2 + $0x2c8] ss:$16 sps:$4 sm:$0xff]  }
  0x6d   :  { %1435 = vmatpush1.bf16.msra.mxu1 %v2739_v37  ;;  %v2900_v37 = vld [vmem:[%s3450_s3 + $0x4] ss:$8 sps:$4 sm:$0xff]  }
  0x6e   :  { %1353 = vmatpush1.bf16.msra.mxu0 %v2736_v36  ;;  %1436 = vmatprep.subr.bf16.mxu1 %v2747_v39  ;;  %v2898_v36 = vld [vmem:[%s3450_s3] ss:$8 sps:$4 sm:$0xff]  }
  0x6f   :  { %1354 = vmatprep.subr.bf16.mxu0 %v2744_v38  ;;  %v2903_v38 = vld [vmem:[%s3450_s3 + $0x14] ss:$8 sps:$4 sm:$0xff]   ;;  %v2820_v39 = vld [vmem:[#allocation2 + $0x2e8] ss:$16 sps:$4 sm:$0xff]  }
  0x71   :  { %1437 = vmatpush1.bf16.msra.mxu1 %v2745_v41  ;;  %v2825_v41 = vld [vmem:[#allocation2 + $0x30c] ss:$16 sps:$4 sm:$0xff]  }
  0x72   :  { %1355 = vmatpush1.bf16.msra.mxu0 %v2742_v40  ;;  %1438 = vmatprep.subr.bf16.mxu1 %v2753_v43  ;;  %v2901_v40 = vld [vmem:[%s3450_s3 + $0x10] ss:$8 sps:$4 sm:$0xff]  }
  0x73   :  { %1356 = vmatprep.subr.bf16.mxu0 %v2750_v42  ;;  %v2906_v42 = vld [vmem:[%s3450_s3 + $0x24] ss:$8 sps:$4 sm:$0xff]   ;;  %v2823_v43 = vld [vmem:[#allocation2 + $0x308] ss:$16 sps:$4 sm:$0xff]  }
  0x75   :  { %1439 = vmatpush1.bf16.msra.mxu1 %v2751_v45  ;;  %v2828_v45 = vld [vmem:[#allocation2 + $0x32c] ss:$16 sps:$4 sm:$0xff]  }
  0x76   :  { %1357 = vmatpush1.bf16.msra.mxu0 %v2748_v44  ;;  %1440 = vmatprep.subr.bf16.mxu1 %v2759_v47  ;;  %v2904_v44 = vld [vmem:[%s3450_s3 + $0x20] ss:$8 sps:$4 sm:$0xff]  }
  0x77   :  { %1358 = vmatprep.subr.bf16.mxu0 %v2756_v46  ;;  %v2909_v46 = vld [vmem:[%s3450_s3 + $0x34] ss:$8 sps:$4 sm:$0xff]   ;;  %v2826_v47 = vld [vmem:[#allocation2 + $0x328] ss:$16 sps:$4 sm:$0xff]  }
  0x79   :  { %1441 = vmatpush1.bf16.msra.mxu1 %v2757_v49  ;;  %v2831_v49 = vld [vmem:[#allocation2 + $0x34c] ss:$16 sps:$4 sm:$0xff]  }
  0x7a   :  { %1359 = vmatpush1.bf16.msra.mxu0 %v2754_v48  ;;  %1442 = vmatprep.subr.bf16.mxu1 %v2765_v51  ;;  %v2907_v48 = vld [vmem:[%s3450_s3 + $0x30] ss:$8 sps:$4 sm:$0xff]  }
  0x7b   :  { %1360 = vmatprep.subr.bf16.mxu0 %v2762_v50  ;;  %v2912_v50 = vld [vmem:[%s3450_s3 + $0x44] ss:$8 sps:$4 sm:$0xff]   ;;  %v2829_v51 = vld [vmem:[#allocation2 + $0x348] ss:$16 sps:$4 sm:$0xff]  }
  0x7d   :  { %1443 = vmatpush1.bf16.msra.mxu1 %v2763_v54  ;;  %v2834_v54 = vld [vmem:[#allocation2 + $0x36c] ss:$16 sps:$4 sm:$0xff]  }
  0x7e   :  { %1361 = vmatpush1.bf16.msra.mxu0 %v2760_v53  ;;  %1444 = vmatprep.subr.bf16.mxu1 %v2771_v56  ;;  %v2910_v53 = vld [vmem:[%s3450_s3 + $0x40] ss:$8 sps:$4 sm:$0xff]  }
  0x7f   :  { %1362 = vmatprep.subr.bf16.mxu0 %v2768_v55  ;;  %v2915_v55 = vld [vmem:[%s3450_s3 + $0x54] ss:$8 sps:$4 sm:$0xff]   ;;  %v2832_v56 = vld [vmem:[#allocation2 + $0x368] ss:$16 sps:$4 sm:$0xff]  }
  0x81   :  { %1445 = vmatpush1.bf16.msra.mxu1 %v2769_v58  ;;  %v2837_v58 = vld [vmem:[#allocation2 + $0x38c] ss:$16 sps:$4 sm:$0xff]  }
  0x82   :  { %1363 = vmatpush1.bf16.msra.mxu0 %v2766_v57  ;;  %1446 = vmatprep.subr.bf16.mxu1 %v2777_v60  ;;  %v2913_v57 = vld [vmem:[%s3450_s3 + $0x50] ss:$8 sps:$4 sm:$0xff]  }
  0x83   :  { %1364 = vmatprep.subr.bf16.mxu0 %v2774_v59  ;;  %v2918_v59 = vld [vmem:[%s3450_s3 + $0x64] ss:$8 sps:$4 sm:$0xff]   ;;  %v2835_v60 = vld [vmem:[#allocation2 + $0x388] ss:$16 sps:$4 sm:$0xff]  }
  0x85   :  { %1447 = vmatpush1.bf16.msra.mxu1 %v2775_v62  ;;  %v2840_v62 = vld [vmem:[#allocation2 + $0x3ac] ss:$16 sps:$4 sm:$0xff]  }
  0x86   :  { %1365 = vmatpush1.bf16.msra.mxu0 %v2772_v61  ;;  %1448 = vmatprep.subr.bf16.mxu1 %v2783_v0  ;;  %v2916_v61 = vld [vmem:[%s3450_s3 + $0x60] ss:$8 sps:$4 sm:$0xff]  }
  0x87   :  { %1366 = vmatprep.subr.bf16.mxu0 %v2780_v63  ;;  %v2921_v63 = vld [vmem:[%s3450_s3 + $0x74] ss:$8 sps:$4 sm:$0xff]   ;;  %v2838_v0 = vld [vmem:[#allocation2 + $0x3a8] ss:$16 sps:$4 sm:$0xff]  }
  0x89   :  { %1449 = vmatpush1.bf16.msra.mxu1 %v2781_v2  ;;  %v2843_v2 = vld [vmem:[#allocation2 + $0x3cc] ss:$16 sps:$4 sm:$0xff]  }
  0x8a   :  { %1367 = vmatpush1.bf16.msra.mxu0 %v2778_v1  ;;  %1450 = vmatprep.subr.bf16.mxu1 %v2789_v4  ;;  %v2919_v1 = vld [vmem:[%s3450_s3 + $0x70] ss:$8 sps:$4 sm:$0xff]  }
  0x8b   :  { %1368 = vmatprep.subr.bf16.mxu0 %v2786_v3  ;;  %v2924_v3 = vld [vmem:[%s3450_s3 + $0x84] ss:$8 sps:$4 sm:$0xff]   ;;  %v2841_v4 = vld [vmem:[#allocation2 + $0x3c8] ss:$16 sps:$4 sm:$0xff]  }
  0x8d   :  { %1451 = vmatpush1.bf16.msra.mxu1 %v2787_v6  ;;  %v2846_v6 = vld [vmem:[#allocation2 + $0x3ec] ss:$16 sps:$4 sm:$0xff]  }
  0x8e   :  { %1369 = vmatpush1.bf16.msra.mxu0 %v2784_v5  ;;  %1452 = vmatprep.subr.bf16.mxu1 %v2795_v9  ;;  %v2922_v5 = vld [vmem:[%s3450_s3 + $0x80] ss:$8 sps:$4 sm:$0xff]  }
  0x8f   :  { %1370 = vmatprep.subr.bf16.mxu0 %v2792_v7  ;;  %v2927_v7 = vld [vmem:[%s3450_s3 + $0x94] ss:$8 sps:$4 sm:$0xff]   ;;  %v2844_v9 = vld [vmem:[#allocation2 + $0x3e8] ss:$16 sps:$4 sm:$0xff]  }
  0x91   :  { %1453 = vmatpush1.bf16.msra.mxu1 %v2793_v12  ;;  %v2849_v12 = vld [vmem:[#allocation2 + $0x40c] ss:$16 sps:$4 sm:$0xff]  }
  0x92   :  { %1371 = vmatpush1.bf16.msra.mxu0 %v2790_v10  ;;  %1463 = vmatprep.subr.bf16.mxu1 %v2798_v14  ;;  %v2925_v10 = vld [vmem:[%s3450_s3 + $0x90] ss:$8 sps:$4 sm:$0xff]  }
  0x93   :  { %1381 = vmatprep.subr.bf16.mxu0 %v2804_v15  ;;  %v2847_v14 = vld [vmem:[#allocation2 + $0x408] ss:$16 sps:$4 sm:$0xff]   ;;  %v2852_v15 = vld [vmem:[#allocation2 + $0x42c] ss:$16 sps:$4 sm:$0xff]  }
  0x94   :  { %1455 = vmatmul.mubr.bf16.vlgmr.msra.gmra.mrb[4].mxu1 %v3133_v8  ;;  %v2808_v8 = vld [vmem:[#allocation2 + $0x268] ss:$16 sps:$4 sm:$0xff]  }
  0x95   :  { %1373 = vmatmul.mubr.bf16.vlgmr.msra.gmra.mrb[0].mxu0 %v3149_v16  ;;  %1464 = vmatpush1.bf16.msra.mxu1 %v2796_v17  ;;  %v2928_v17 = vld [vmem:[%s3450_s3 + $0xa0] ss:$8 sps:$4 sm:$0xff]  }
  0x96   :  { %1382 = vmatpush1.bf16.msra.mxu0 %v2802_v18  ;;  %1465 = vmatprep.subr.bf16.mxu1 %v2801_v19  ;;  %v2933_v18 = vld [vmem:[%s3450_s3 + $0xb4] ss:$8 sps:$4 sm:$0xff]   ;;  %v2850_v19 = vld [vmem:[#allocation2 + $0x428] ss:$16 sps:$4 sm:$0xff]  }
  0x97   :  { %1413 = vmatprep.mubr.bf16.mxu0 %v3061_v23  ;;  %1495 = vmatprep.mubr.bf16.mxu1 %v3123_v52  ;;  %v2819_v52 = vld [vmem:[#allocation2 + $0x2cc] ss:$16 sps:$4 sm:$0xff]  }
  0x98   :  { %1545 = vmatprep.subr.bf16.mxu0 %v2894_v20  ;;  %v2855_v20 = vld [vmem:[#allocation2 + $0x44c] ss:$16 sps:$4 sm:$0xff]  }
  0x99   :  { %1466 = vmatpush1.bf16.msra.mxu1 %v2799_v21  ;;  %v2931_v21 = vld [vmem:[%s3450_s3 + $0xb0] ss:$8 sps:$4 sm:$0xff]  }
  0x9a   :  { %1467 = vmatprep.subr.bf16.mxu1 %v2807_v22  ;;  %v2936_v22 = vld [vmem:[%s3450_s3 + $0xc4] ss:$8 sps:$4 sm:$0xff]  }
  0x9d   :  { %1468 = vmatpush1.bf16.msra.mxu1 %v2805_v24  ;;  %v2939_v24 = vld [vmem:[%s3450_s3 + $0xd4] ss:$8 sps:$4 sm:$0xff]  }
  0x9e   :  { %1469 = vmatprep.subr.bf16.mxu1 %v2810_v26  ;;  %v2861_v26 = vld [vmem:[#allocation2 + $0x48c] ss:$16 sps:$4 sm:$0xff]  }
  0xa1   :  { %2464 = vmatmul.mubr.msk.bf16.vlgmr.msra.gmra.mrb[0].mxu0 %vm1254_vm0, %v55_v28  ;;  %1470 = vmatpush1.bf16.msra.mxu1 %v2808_v8  ;;  %v2937_v8 = vld [vmem:[%s3450_s3 + $0xd0] ss:$8 sps:$4 sm:$0xff]  }
  0xa2   :  { %1546 = vmatpush1.bf16.msra.mxu0 %v2892_v27  ;;  %1471 = vmatprep.subr.bf16.mxu1 %v2813_v29  ;;  %v2859_v27 = vld [vmem:[#allocation2 + $0x488] ss:$16 sps:$4 sm:$0xff]  }
  0xa3   :  { %1577 = vmatprep.mubr.bf16.mxu0 %v3061_v23  ;;  %1990 = vmatprep.subr.bf16.mxu0 %v2900_v37  ;;  %v2853_v23 = vld [vmem:[#allocation2 + $0x448] ss:$16 sps:$4 sm:$0xff]   ;;  %v2942_v37 = vld [vmem:[%s3450_s3 + $0xe4] ss:$8 sps:$4 sm:$0xff]  }
  0xa4   :  { %v2862_v29 = vld [vmem:[#allocation2 + $0x4a8] ss:$16 sps:$4 sm:$0xff]  }
  0xa5   :  { %1472 = vmatpush1.bf16.msra.mxu1 %v2811_v30  ;;  %v2867_v30 = vld [vmem:[#allocation2 + $0x4cc] ss:$16 sps:$4 sm:$0xff]  }
  0xa6   :  { %1473 = vmatprep.subr.bf16.mxu1 %v2816_v31  ;;  %v2865_v31 = vld [vmem:[#allocation2 + $0x4c8] ss:$16 sps:$4 sm:$0xff]  }
  0xa9   :  { %2465 = vmatmul.mubr.msk.bf16.vlgmr.msra.gmra.mrb[4].mxu0 %vm1254_vm0, %v55_v28  ;;  %1474 = vmatpush1.bf16.msra.mxu1 %v2814_v32  ;;  %v2864_v28 = vld [vmem:[#allocation2 + $0x4ac] ss:$16 sps:$4 sm:$0xff]  }
  0xaa   :  { %1475 = vmatprep.subr.bf16.mxu1 %v2819_v52  ;;  %1991 = vmatpush1.bf16.msra.mxu0 %v2898_v36  ;;  %v2870_v32 = vld [vmem:[#allocation2 + $0x4ec] ss:$16 sps:$4 sm:$0xff]   ;;  %v2868_v52 = vld [vmem:[#allocation2 + $0x4e8] ss:$16 sps:$4 sm:$0xff]  }
  0xab   :  { %1992 = vmatprep.subr.bf16.mxu0 %v2903_v38  ;;  %v2876_v36 = vld [vmem:[#allocation2 + $0x52c] ss:$16 sps:$4 sm:$0xff]   ;;  %v2940_v38 = vld [vmem:[%s3450_s3 + $0xe0] ss:$8 sps:$4 sm:$0xff]  }
  0xad   :  { %1476 = vmatpush1.bf16.msra.mxu1 %v2817_v33  ;;  %v2873_v33 = vld [vmem:[#allocation2 + $0x50c] ss:$16 sps:$4 sm:$0xff]  }
  0xae   :  { %1477 = vmatprep.subr.bf16.mxu1 %v2822_v34  ;;  %1993 = vmatpush1.bf16.msra.mxu0 %v2901_v40  ;;  %v2871_v34 = vld [vmem:[#allocation2 + $0x508] ss:$16 sps:$4 sm:$0xff]   ;;  %v2879_v40 = vld [vmem:[#allocation2 + $0x54c] ss:$16 sps:$4 sm:$0xff]  }
  0xaf   :  { %1994 = vmatprep.subr.bf16.mxu0 %v2906_v42  ;;  %v2943_v42 = vld [vmem:[%s3450_s3 + $0xf0] ss:$8 sps:$4 sm:$0xff]  }
  0xb1   :  { %1478 = vmatpush1.bf16.msra.mxu1 %v2820_v39  ;;  %v2874_v39 = vld [vmem:[#allocation2 + $0x528] ss:$16 sps:$4 sm:$0xff]  }
  0xb2   :  { %1479 = vmatprep.subr.bf16.mxu1 %v2825_v41  ;;  %1995 = vmatpush1.bf16.msra.mxu0 %v2904_v44  ;;  %v2945_v41 = vld [vmem:[%s3450_s3 + $0xf4] ss:$8 sps:$4 sm:$0xff]  }
  0xb3   :  { %1996 = vmatprep.subr.bf16.mxu0 %v2909_v46  ;;  %v2882_v44 = vld [vmem:[#allocation2 + $0x56c] ss:$16 sps:$4 sm:$0xff]   ;;  %v2880_v46 = vld [vmem:[#allocation2 + $0x568] ss:$16 sps:$4 sm:$0xff]  }
  0xb5   :  { %1480 = vmatpush1.bf16.msra.mxu1 %v2823_v43  ;;  %v2877_v43 = vld [vmem:[#allocation2 + $0x548] ss:$16 sps:$4 sm:$0xff]  }
  0xb6   :  { %1481 = vmatprep.subr.bf16.mxu1 %v2828_v45  ;;  %1997 = vmatpush1.bf16.msra.mxu0 %v2907_v48  ;;  %v2948_v45 = vld [vmem:[%s3450_s3 + $0x104] ss:$8 sps:$4 sm:$0xff]   ;;  %v2883_v48 = vld [vmem:[#allocation2 + $0x588] ss:$16 sps:$4 sm:$0xff]  }
  0xb7   :  { %1998 = vmatprep.subr.bf16.mxu0 %v2912_v50  ;;  %v2886_v50 = vld [vmem:[#allocation2 + $0x5a8] ss:$16 sps:$4 sm:$0xff]  }
  0xb9   :  { %1482 = vmatpush1.bf16.msra.mxu1 %v2826_v47  ;;  %v2885_v47 = vld [vmem:[#allocation2 + $0x58c] ss:$16 sps:$4 sm:$0xff]  }
  0xba   :  { %1483 = vmatprep.subr.bf16.mxu1 %v2831_v49  ;;  %1999 = vmatpush1.bf16.msra.mxu0 %v2910_v53  ;;  %v2888_v49 = vld [vmem:[#allocation2 + $0x5ac] ss:$16 sps:$4 sm:$0xff]   ;;  %v2889_v53 = vld [vmem:[#allocation2 + $0x5c8] ss:$16 sps:$4 sm:$0xff]  }
  0xbb   :  { %2000 = vmatprep.subr.bf16.mxu0 %v2915_v55  ;;  %v2895_v55 = vld [vmem:[#allocation2 + $0x5e8] ss:$16 sps:$4 sm:$0xff]  }
  0xbd   :  { %1484 = vmatpush1.bf16.msra.mxu1 %v2829_v51  ;;  %v2891_v51 = vld [vmem:[#allocation2 + $0x5cc] ss:$16 sps:$4 sm:$0xff]  }
  0xbe   :  { %1485 = vmatprep.subr.bf16.mxu1 %v2834_v54  ;;  %2001 = vmatpush1.bf16.msra.mxu0 %v2913_v57  ;;  %v2897_v54 = vld [vmem:[#allocation2 + $0x5ec] ss:$16 sps:$4 sm:$0xff]  }
  0xbf   :  { %2002 = vmatprep.subr.bf16.mxu0 %v2918_v59 }
  0xc1   :  { %1486 = vmatpush1.bf16.msra.mxu1 %v2832_v56 }
  0xc2   :  { %1487 = vmatprep.subr.bf16.mxu1 %v2837_v58  ;;  %2003 = vmatpush1.bf16.msra.mxu0 %v2916_v61 }
  0xc3   :  { %2004 = vmatprep.subr.bf16.mxu0 %v2921_v63  ;;  %v3265_v63 = vld [vmem:[%s3449_s2] sm:$0xf] }
  0xc5   :  { %1488 = vmatpush1.bf16.msra.mxu1 %v2835_v60  ;;  %v254_v60 = vlaneseq }
  0xc6   :  { %1489 = vmatprep.subr.bf16.mxu1 %v2840_v62  ;;  %2005 = vmatpush1.bf16.msra.mxu0 %v2919_v1 }
  0xc7   :  { %2006 = vmatprep.subr.bf16.mxu0 %v2924_v3  ;;  %v3259_v61 = vshrl.u32 %v254_v60, 7  ;;  %v2994_v3 = vld [vmem:[%s3452_s5 + $0x40] sm:$0xff]   ;;  %v2993_v60 = vld [vmem:[%s3450_s3 + $0x1f4] ss:$8 sps:$4 sm:$0xff]  }
  0xc9   :  { %1490 = vmatpush1.bf16.msra.mxu1 %v2838_v0  ;;  %v256_v62 = vsub.s32 0, %v3259_v61  ;;  %v260_v0 = vsub.s32 1, %v3259_v61 }
  0xca   :  { %1491 = vmatprep.subr.bf16.mxu1 %v2843_v2  ;;  %2007 = vmatpush1.bf16.msra.mxu0 %v2922_v5  ;;  %v2996_v5 = vld [vmem:[%s3452_s5 + $0x48] sm:$0xff]  }
  0xcb   :  { %2008 = vmatprep.subr.bf16.mxu0 %v2927_v7  ;;  %v261_v1 = vrot.slane %v3265_v63, %v260_v0 }
  0xcd   :  { %1492 = vmatpush1.bf16.msra.mxu1 %v2841_v4  ;;  %v2995_v4 = vld [vmem:[%s3452_s5] sm:$0xff]  }
  0xce   :  { %1493 = vmatprep.subr.bf16.mxu1 %v2846_v6  ;;  %2009 = vmatpush1.bf16.msra.mxu0 %v2925_v10 }
  0xcf   :  { %2010 = vmatprep.subr.bf16.mxu0 %v2930_v13 }
  0xd1   :  { %1494 = vmatpush1.bf16.msra.mxu1 %v2844_v9 }
  0xd2   :  { %1504 = vmatprep.subr.bf16.mxu1 %v2849_v12  ;;  %2011 = vmatpush1.bf16.msra.mxu0 %v2928_v17 }
  0xd3   :  { %2012 = vmatprep.subr.bf16.mxu0 %v2933_v18  ;;  %v2998_v18 = vld [vmem:[%s3452_s5 + $0x50] sm:$0xff]  }
  0xd4   :  { %1496 = vmatmul.mubr.bf16.vlgmr.msra.gmra.mrb[4].mxu1 %v3135_v11  ;;  %v2858_v11 = vld [vmem:[#allocation2 + $0x46c] ss:$16 sps:$4 sm:$0xff]  }
  0xd5   :  { %1505 = vmatpush1.bf16.msra.mxu1 %v2847_v14  ;;  %1536 = vmatprep.mubr.bf16.mxu1 %v3143_v35  ;;  %v2934_v35 = vld [vmem:[%s3450_s3 + $0xc0] ss:$8 sps:$4 sm:$0xff]  }
  0xd6   :  { %1506 = vmatprep.subr.bf16.mxu1 %v2852_v15  ;;  %2013 = vmatpush1.bf16.msra.mxu0 %v2931_v21  ;;  %v2997_v14 = vld [vmem:[%s3452_s5 + $0x8] sm:$0xff]  }
  0xd7   :  { %2014 = vmatprep.subr.bf16.mxu0 %v2936_v22  ;;  %v2946_v21 = vld [vmem:[%s3450_s3 + $0x100] ss:$8 sps:$4 sm:$0xff]   ;;  %v2999_v22 = vld [vmem:[%s3452_s5 + $0x10] sm:$0xff]  }
  0xd9   :  { %1507 = vmatpush1.bf16.msra.mxu1 %v2850_v19 }
  0xda   :  { %1508 = vmatprep.subr.bf16.mxu1 %v2855_v20  ;;  %2015 = vmatpush1.bf16.msra.mxu0 %v2934_v35  ;;  %v3000_v35 = vld [vmem:[%s3452_s5 + $0x58] sm:$0xff]  }
  0xdb   :  { %2016 = vmatprep.subr.bf16.mxu0 %v2939_v24 }
  0xdd   :  { %1509 = vmatpush1.bf16.msra.mxu1 %v2853_v23 }
  0xde   :  { %1510 = vmatprep.subr.bf16.mxu1 %v2858_v11  ;;  %2017 = vmatpush1.bf16.msra.mxu0 %v2937_v8  ;;  %v2951_v11 = vld [vmem:[%s3450_s3 + $0x114] ss:$8 sps:$4 sm:$0xff]  }
  0xdf   :  { %2018 = vmatprep.subr.bf16.mxu0 %v2942_v37  ;;  %v2960_v37 = vld [vmem:[%s3450_s3 + $0x144] ss:$8 sps:$4 sm:$0xff]  }
  0xe1   :  { %1511 = vmatpush1.bf16.msra.mxu1 %v2856_v25 }
  0xe2   :  { %1512 = vmatprep.subr.bf16.mxu1 %v2861_v26  ;;  %2019 = vmatpush1.bf16.msra.mxu0 %v2940_v38  ;;  %v2949_v26 = vld [vmem:[%s3450_s3 + $0x110] ss:$8 sps:$4 sm:$0xff]   ;;  %v2958_v38 = vld [vmem:[%s3450_s3 + $0x140] ss:$8 sps:$4 sm:$0xff]  }
  0xe3   :  { %2020 = vmatprep.subr.bf16.mxu0 %v2945_v41  ;;  %v2966_v41 = vld [vmem:[%s3450_s3 + $0x164] ss:$8 sps:$4 sm:$0xff]  }
  0xe5   :  { %1513 = vmatpush1.bf16.msra.mxu1 %v2859_v27  ;;  %v3001_v27 = vld [vmem:[%s3452_s5 + $0x18] sm:$0xff]  }
  0xe6   :  { %1514 = vmatprep.subr.bf16.mxu1 %v2864_v28  ;;  %2021 = vmatpush1.bf16.msra.mxu0 %v2943_v42  ;;  %v2954_v28 = vld [vmem:[%s3450_s3 + $0x124] ss:$8 sps:$4 sm:$0xff]   ;;  %v2964_v42 = vld [vmem:[%s3450_s3 + $0x160] ss:$8 sps:$4 sm:$0xff]  }
  0xe7   :  { %2031 = vmatprep.subr.bf16.mxu0 %v2948_v45  ;;  %v2972_v45 = vld [vmem:[%s3450_s3 + $0x184] ss:$8 sps:$4 sm:$0xff]  }
  0xe9   :  { %1515 = vmatpush1.bf16.msra.mxu1 %v2862_v29 }
  0xea   :  { %1516 = vmatprep.subr.bf16.mxu1 %v2867_v30  ;;  %v3002_v30 = vld [vmem:[%s3452_s5 + $0x60] sm:$0xff]  }
  0xed   :  { %1517 = vmatpush1.bf16.msra.mxu1 %v2865_v31  ;;  %v2952_v31 = vld [vmem:[%s3450_s3 + $0x120] ss:$8 sps:$4 sm:$0xff]  }
  0xee   :  { %1518 = vmatprep.subr.bf16.mxu1 %v2870_v32  ;;  %v3003_v32 = vld [vmem:[%s3452_s5 + $0x20] sm:$0xff]  }
  0xf1   :  { %1519 = vmatpush1.bf16.msra.mxu1 %v2868_v52  ;;  %v2957_v52 = vld [vmem:[%s3450_s3 + $0x134] ss:$8 sps:$4 sm:$0xff]  }
  0xf2   :  { %1520 = vmatprep.subr.bf16.mxu1 %v2873_v33  ;;  %v3004_v33 = vld [vmem:[%s3452_s5 + $0x68] sm:$0xff]  }
  0xf5   :  { %1521 = vmatpush1.bf16.msra.mxu1 %v2871_v34  ;;  %v2955_v34 = vld [vmem:[%s3450_s3 + $0x130] ss:$8 sps:$4 sm:$0xff]  }
  0xf6   :  { %1522 = vmatprep.subr.bf16.mxu1 %v2876_v36  ;;  %v3005_v36 = vld [vmem:[%s3452_s5 + $0x28] sm:$0xff]  }
  0xf9   :  { %1523 = vmatpush1.bf16.msra.mxu1 %v2874_v39  ;;  %v2963_v39 = vld [vmem:[%s3450_s3 + $0x154] ss:$8 sps:$4 sm:$0xff]  }
  0xfa   :  { %1524 = vmatprep.subr.bf16.mxu1 %v2879_v40  ;;  %v2961_v40 = vld [vmem:[%s3450_s3 + $0x150] ss:$8 sps:$4 sm:$0xff]  }
  0xfd   :  { %1525 = vmatpush1.bf16.msra.mxu1 %v2877_v43  ;;  %v2969_v43 = vld [vmem:[%s3450_s3 + $0x174] ss:$8 sps:$4 sm:$0xff]  }
  0xfe   :  { %1526 = vmatprep.subr.bf16.mxu1 %v2882_v44  ;;  %v2967_v44 = vld [vmem:[%s3450_s3 + $0x170] ss:$8 sps:$4 sm:$0xff]  }
 0x101   :  { %1527 = vmatpush1.bf16.msra.mxu1 %v2880_v46  ;;  %v2970_v46 = vld [vmem:[%s3450_s3 + $0x180] ss:$8 sps:$4 sm:$0xff]  }
 0x102   :  { %1528 = vmatprep.subr.bf16.mxu1 %v2885_v47  ;;  %v2975_v47 = vld [vmem:[%s3450_s3 + $0x194] ss:$8 sps:$4 sm:$0xff]  }
 0x105   :  { %1529 = vmatpush1.bf16.msra.mxu1 %v2883_v48  ;;  %v2973_v48 = vld [vmem:[%s3450_s3 + $0x190] ss:$8 sps:$4 sm:$0xff]  }
 0x106   :  { %1530 = vmatprep.subr.bf16.mxu1 %v2888_v49  ;;  %v2978_v49 = vld [vmem:[%s3450_s3 + $0x1a4] ss:$8 sps:$4 sm:$0xff]  }
 0x109   :  { %1531 = vmatpush1.bf16.msra.mxu1 %v2886_v50  ;;  %v2976_v50 = vld [vmem:[%s3450_s3 + $0x1a0] ss:$8 sps:$4 sm:$0xff]  }
 0x10a   :  { %1532 = vmatprep.subr.bf16.mxu1 %v2891_v51  ;;  %v2981_v51 = vld [vmem:[%s3450_s3 + $0x1b4] ss:$8 sps:$4 sm:$0xff]  }
 0x10d   :  { %1533 = vmatpush1.bf16.msra.mxu1 %v2889_v53  ;;  %v2979_v53 = vld [vmem:[%s3450_s3 + $0x1b0] ss:$8 sps:$4 sm:$0xff]  }
 0x10e   :  { %1534 = vmatprep.subr.bf16.mxu1 %v2897_v54  ;;  %v2984_v54 = vld [vmem:[%s3450_s3 + $0x1c4] ss:$8 sps:$4 sm:$0xff]  }
 0x111   :  { %1535 = vmatpush1.bf16.msra.mxu1 %v2895_v55  ;;  %v2982_v55 = vld [vmem:[%s3450_s3 + $0x1c0] ss:$8 sps:$4 sm:$0xff]  }
 0x112   :  { %2547 = vmatprep.subr.bf16.mxu1 %v2994_v3 }
 0x114   :  { %1537 = vmatmul.mubr.bf16.vlgmr.msra.gmra.mrb[4].mxu1 %v3149_v16  ;;  %v257_v16 = vrot.slane %v3265_v63, %v256_v62 }
 0x115   :  { %2548 = vmatpush3.bf16.msra.mxu1 %v2995_v4 }
 0x116   :  { %2549 = vmatprep.subr.bf16.mxu1 %v2996_v5 }
 0x119   :  { %2550 = vmatpush3.bf16.msra.mxu1 %v2997_v14 }
 0x11a   :  { %2551 = vmatprep.subr.bf16.mxu1 %v2998_v18 }
 0x11d   :  { %2552 = vmatpush3.bf16.msra.mxu1 %v2999_v22  ;;  %v3009_v22 = vld [vmem:[%s3452_s5 + $0x38] sm:$0xff]  }
 0x11e   :  { %2553 = vmatprep.subr.bf16.mxu1 %v3000_v35 }
 0x121   :  { %2554 = vmatpush3.bf16.msra.mxu1 %v3001_v27 }
 0x122   :  { %2555 = vmatprep.subr.bf16.mxu1 %v3002_v30 }
 0x125   :  { %2556 = vmatpush3.bf16.msra.mxu1 %v3003_v32 }
 0x126   :  { %2557 = vmatprep.subr.bf16.mxu1 %v3004_v33 }
 0x127   :  { %v1292_v56 = vpop.f32.mrb[0].mxu1 }
 0x128   :  { %v1294_v57 = vpop.f32.mrb[1].mxu1  ;;  %v1293_v2 = vadd.f32 %v1292_v56, %v257_v16  ;;  %v2987_v56 = vld [vmem:[%s3450_s3 + $0x1d4] ss:$8 sps:$4 sm:$0xff]   ;;  %v2991_v16 = vld [vmem:[%s3450_s3 + $0x1f0] ss:$8 sps:$4 sm:$0xff]  }
 0x129   :  { %v1296_v58 = vpop.f32.mrb[2].mxu1  ;;  %v1295_v6 = vadd.f32 %v1294_v57, %v261_v1  ;;  %2558 = vmatpush3.bf16.msra.mxu1 %v3005_v36  ;;  %v2985_v57 = vld [vmem:[%s3450_s3 + $0x1d0] ss:$8 sps:$4 sm:$0xff]   ;;  %v264_v1 = vsub.s32 2, %v3259_v61 }
 0x12a   :  { %v1297_v59 = vpop.f32.mrb[3].mxu1  ;;  %v2990_v58 = vld [vmem:[%s3450_s3 + $0x1e4] ss:$8 sps:$4 sm:$0xff]  }
 0x12b   :  { %v2988_v59 = vld [vmem:[%s3450_s3 + $0x1e0] ss:$8 sps:$4 sm:$0xff]   ;;  %v265_v3 = vrot.slane %v3265_v63, %v264_v1 }
 0x174   :  { %v1415_v7 = vpop.f32.mrb[0].mxu0 }
 0x175   :  { %v2570_v9 = vadd.f32 %v1415_v7, %v1293_v2  ;;  %v1417_v10 = vpop.f32.mrb[1].mxu0  ;;  %v268_v2 = vsub.s32 3, %v3259_v61 }
 0x176   :  { %v2572_v12 = vadd.f32 %v1417_v10, %v1295_v6  ;;  %v1419_v13 = vpop.f32.mrb[2].mxu0 }
 0x177   :  { %v1586_v15 = vmax.f32 %v2570_v9, 0.0  ;;  %v1420_v17 = vpop.f32.mrb[3].mxu0  ;;  %v269_v4 = vrot.slane %v3265_v63, %v268_v2  ;;  %v3006_v63 = vld [vmem:[%s3452_s5 + $0x70] sm:$0xff]  }
 0x178   :  { %v1587_v19 = vmax.f32 %v2572_v12, 0.0  ;;  %2559 = vmatprep.subr.bf16.mxu1 %v3006_v63 }
 0x179   :  { %v1590_v23 = vpack.c.bf16 %v1586_v15, %v1586_v15 }
 0x17a   :  { %v1591_v20 = vpack.c.bf16 %v1587_v19, %v1587_v19 }
 0x17c   :  { %2022 = vmatprep.mubr.bf16.mxu0 %v1591_v20  ;;  %v3301_v24 = vpop.f32.mrb[4].mxu0  ;;  %v3007_v20 = vld [vmem:[%s3452_s5 + $0x30] sm:$0xff]  }
 0x17d   :  { %2023 = vmatmul.mubr.bf16.vlgmr.msra.gmra.mrb[8].mxu0 %v1590_v23  ;;  %v3303_v25 = vpop.f32.mrb[5].mxu0  ;;  %2560 = vmatpush3.bf16.msra.mxu1 %v3007_v20  ;;  %v1658_v23 = vld [vmem:[%s3451_s4] sm:$0x3] }
 0x17e   :  { %2032 = vmatpush1.bf16.msra.mxu0 %v2946_v21  ;;  %v1583_v8 = vpop.f32.mrb[6].mxu0  ;;  %v3008_v21 = vld [vmem:[%s3452_s5 + $0x78] sm:$0xff]   ;;  %v1667_v35 = vrot.slane %v1658_v23, %v260_v0 }
 0x17f   :  { %2033 = vmatprep.subr.bf16.mxu0 %v2951_v11  ;;  %v1584_v29 = vpop.f32.mrb[7].mxu0  ;;  %2561 = vmatprep.subr.bf16.mxu1 %v3008_v21  ;;  %v1663_v11 = vrot.slane %v1658_v23, %v256_v62  ;;  %v2530_v62 = vld [vmem:[%s3453_s6] ss:$0 sm:$0xff] }
 0x181   :  { %2562 = vmatpush3.bf16.msra.mxu1 %v3009_v22 }
 0x182   :  { %2034 = vmatpush1.bf16.msra.mxu0 %v2949_v26 }
 0x183   :  { %2035 = vmatprep.subr.bf16.mxu0 %v2954_v28 }
 0x186   :  { %2036 = vmatpush1.bf16.msra.mxu0 %v2952_v31 }
 0x187   :  { %2037 = vmatprep.subr.bf16.mxu0 %v2957_v52 }
 0x18a   :  { %2038 = vmatpush1.bf16.msra.mxu0 %v2955_v34 }
 0x18b   :  { %2039 = vmatprep.subr.bf16.mxu0 %v2960_v37 }
 0x18e   :  { %2040 = vmatpush1.bf16.msra.mxu0 %v2958_v38 }
 0x18f   :  { %2041 = vmatprep.subr.bf16.mxu0 %v2963_v39 }
 0x192   :  { %2042 = vmatpush1.bf16.msra.mxu0 %v2961_v40 }
 0x193   :  { %2043 = vmatprep.subr.bf16.mxu0 %v2966_v41 }
 0x196   :  { %2044 = vmatpush1.bf16.msra.mxu0 %v2964_v42 }
 0x197   :  { %2045 = vmatprep.subr.bf16.mxu0 %v2969_v43 }
 0x19a   :  { %2046 = vmatpush1.bf16.msra.mxu0 %v2967_v44 }
 0x19b   :  { %2047 = vmatprep.subr.bf16.mxu0 %v2972_v45 }
 0x19e   :  { %2048 = vmatpush1.bf16.msra.mxu0 %v2970_v46 }
 0x19f   :  { %2049 = vmatprep.subr.bf16.mxu0 %v2975_v47 }
 0x1a2   :  { %2050 = vmatpush1.bf16.msra.mxu0 %v2973_v48 }
 0x1a3   :  { %2051 = vmatprep.subr.bf16.mxu0 %v2978_v49 }
 0x1a6   :  { %2052 = vmatpush1.bf16.msra.mxu0 %v2976_v50 }
 0x1a7   :  { %2053 = vmatprep.subr.bf16.mxu0 %v2981_v51 }
 0x1aa   :  { %2054 = vmatpush1.bf16.msra.mxu0 %v2979_v53 }
 0x1ab   :  { %2055 = vmatprep.subr.bf16.mxu0 %v2984_v54 }
 0x1ae   :  { %2056 = vmatpush1.bf16.msra.mxu0 %v2982_v55 }
 0x1af   :  { %2057 = vmatprep.subr.bf16.mxu0 %v2987_v56 }
 0x1b2   :  { %2058 = vmatpush1.bf16.msra.mxu0 %v2985_v57 }
 0x1b3   :  { %2059 = vmatprep.subr.bf16.mxu0 %v2990_v58 }
 0x1b6   :  { %2060 = vmatpush1.bf16.msra.mxu0 %v2988_v59 }
 0x1b7   :  { %2061 = vmatprep.subr.bf16.mxu0 %v2993_v60 }
 0x1ba   :  { %2062 = vmatpush1.bf16.msra.mxu0 %v2991_v16 }
 0x1e7   :  { %v1538_v5 = vpop.f32.mrb[4].mxu1 }
 0x1e8   :  { %v2573_v6 = vadd.f32 %v1538_v5, %v265_v3  ;;  %v1540_v7 = vpop.f32.mrb[5].mxu1 }
 0x1e9   :  { %v2575_v9 = vadd.f32 %v1540_v7, %v269_v4  ;;  %v1542_v10 = vpop.f32.mrb[6].mxu1 }
 0x1ea   :  { %v2574_v12 = vadd.f32 %v2573_v6, %v3301_v24  ;;  %v1543_v13 = vpop.f32.mrb[7].mxu1 }
 0x1eb   :  { %v2576_v14 = vadd.f32 %v2575_v9, %v3303_v25 }
 0x1ec   :  { %v1588_v15 = vmax.f32 %v2574_v12, 0.0 }
 0x1ed   :  { %v1589_v17 = vmax.f32 %v2576_v14, 0.0 }
 0x1ee   :  { %v1592_v19 = vpack.c.bf16 %v1588_v15, %v1588_v15 }
 0x1ef   :  { %v1593_v18 = vpack.c.bf16 %v1589_v17, %v1589_v17 }
 0x1f1   :  { %2063 = vmatprep.mubr.bf16.mxu0 %v1593_v18 }
 0x1f2   :  { %2064 = vmatmul.mubr.bf16.vlgmr.msra.gmra.mrb[8].mxu0 %v1592_v19 }
 0x2c5   :  { %v2065_v24 = vpop.f32.mrb[8].mxu0 }
 0x2c6   :  { %v2577_v25 = vadd.f32 %v2065_v24, %v1663_v11  ;;  %v2067_v26 = vpop.f32.mrb[9].mxu0 }
 0x2c7   :  { %v2578_v8 = vadd.f32 %v2067_v26, %v1667_v35  ;;  %v2069_v27 = vpop.f32.mrb[10].mxu0 }
 0x2c8   :  { %v2072_v28 = vmax.f32 %v2577_v25, 0.0  ;;  %v2070_v29 = vpop.f32.mrb[11].mxu0 }
 0x2c9   :  { %v2073_v30 = vmax.f32 %v2578_v8, 0.0 }
 0x2ca   :  { %v2074_v32 = vpack.c.bf16 %v2072_v28, %v2072_v28 }
 0x2cb   :  { %v2075_v31 = vpack.c.bf16 %v2073_v30, %v2073_v30 }
 0x2cd   :  { %2243 = vmatprep.mubr.bf16.mxu1 %v2075_v31 }
 0x2ce   :  { %2244 = vmatmul.mubr.bf16.vlgmr.msra.gmra.mrb[8].mxu1 %v2074_v32 }
 0x3a1   :  { %v2563_v52 = vpop.f32.mrb[8].mxu1 }
 0x3a2   :  { %v2564_v33 = vpop.f32.mrb[9].mxu1 }
 0x3a3   :  { %v2565_v61 = vadd.f32 %v2564_v33, %v2563_v52  ;;  %v2566_v0 = vpop.f32.mrb[10].mxu1 }
 0x3a4   :  { %v2567_v34 = vpop.f32.mrb[11].mxu1 }
 0x3a5   :  { %v2246_v36 = vadd.f32 %v2565_v61, %v2530_v62 }
 0x3a7   :  { %v2251_v37 = vmax.f32 %v2246_v36, 0.0 }
 0x3a9   :  { %2252 = vst [vmem:[#allocation5] sm:$0xff] %v2251_v37 }
 0x3aa   :  { %3043 = shalt.err (!%p3040_p12)
}
 0x3ab   :  { %s3044_s6 = scalar_lea.hbm %s3454_s7, 128 }
 0x3ac   :  { %p3045_p13 = scmp.ne.s32.totalorder %s3454_s7, %s3044_s6  ;;  %p3048_p0 = scmp.lt.u32.totalorder %s3044_s6, %s3454_s7 }
 0x3ae   :  { %p3050_p1 = pnand %p3048_p0, %p3045_p13 }
 0x3b0   :  { %3053 = shalt.err (!%p3050_p1)
}
 0x3b1   :  { %2262 = dma.vmem_to_hbm [thread:$0]  %s2260_s14, 128, %s3454_s7, [#allocation4]  }
 0x3b2   :  { %3056 = dma.done.wait [#allocation4], 128  }
 0x3b3   :  { %3057 = vsyncadd [#allocation4], 4294967168 }
 0x3b4   :  { %2266 = vsyncpa [#allocation3], 1 }
 0x3b5   :  { %2267 = vsyncpa [#allocation4], 1 }

</bundles_post_ra>
